<compile_context>
chip_gen: v7x
topology: tpu7x:2x2x1
jax: 0.10.0
libtpu: 0.0.40
codegen_flags: <defaults>
</compile_context>

<pallas_src>
import math
from functools import partial

import jax
import jax.numpy as jnp
from jax import lax
from jax.experimental import pallas as pl
from jax.experimental.pallas import tpu as pltpu

_BN_EPS = 1e-5
_NEG_SLOPE = 0.2          # GraphLayer negative_slope default
_MASK_NEG = -1e30
_VMEM_LIMIT = 32 * 1024 * 1024   # safe on v5e/v6e (128 MiB) and v7x (64 MiB/TC)


def _round_up(v, m):
    return ((v + m - 1) // m) * m


def _tile_and_pad(n, tile_rows):
    """Square (T, T) node tiles; T a multiple of 128 (int8/bf16/f32 safe)."""
    t = max(128, (int(tile_rows) // 128) * 128)
    t = min(t, _round_up(n, 128))
    n_pad = _round_up(n, t)
    return t, n_pad


def build_adjacency(edge_index, num_nodes, n_pad):
    """Dense int8 mask: adj[dst, src] = 1 for edges, diagonal forced to 1
    (remove_self_loops + add_self_loops).  Build once and reuse when the
    top-k graph is static across forward calls (it is in GDN)."""
    del num_nodes  # padded rows only get the forced self-loop
    src, dst = edge_index[0], edge_index[1]
    adj = jnp.zeros((n_pad, n_pad), jnp.int8).at[dst, src].set(1)
    diag = jnp.arange(n_pad)
    return adj.at[diag, diag].set(1)


# ---------------------------------------------------------------- kernels ---
def _project_kernel(x_ref, w_ref, wx_ref):
    # Linear (bias-free, per GraphLayer) on the MXU: bf16 operands, f32 acc.
    wx = jnp.dot(x_ref[...].astype(jnp.bfloat16), w_ref[...],
                 preferred_element_type=jnp.float32)          # (T, Cp)
    wx_ref[...] = wx.astype(wx_ref.dtype)                     # bf16, lane-dense


def _attn_kernel(s_tgt_ref, m_ref, s_src_ref, adj_ref, wx_ref,
                 h_ref, stats_ref, l_sc, acc_sc, *, tm, n_real):
    """Row tile i ("parallel"), source-column tile k ("arbitrary").
    Streaming masked softmax: m_ref holds a per-row analytic max bound, so no
    running-max rescaling is needed; denominator / accumulator live in VMEM
    scratch across the k axis."""
    i = pl.program_id(0)
    k = pl.program_id(1)

    @pl.when(k == 0)
    def _():
        l_sc[...] = jnp.zeros_like(l_sc)
        acc_sc[...] = jnp.zeros_like(acc_sc)

    # alpha-logits: leaky_relu(s_tgt[i] + s_src[j]); non-edges masked out.
    logits = s_tgt_ref[...] + s_src_ref[...]            # (T,1)+(1,T) -> (T,T)
    logits = jnp.where(logits > 0, logits, _NEG_SLOPE * logits)
    edge = adj_ref[...].astype(jnp.float32) > 0.0        # int8 {0,1} -> mask
    logits = jnp.where(edge, logits, _MASK_NEG)

    p = jnp.exp(logits - m_ref[...])                     # m >= all logits
    l_sc[...] += jnp.sum(p, axis=-1, keepdims=True)
    acc_sc[...] += jnp.dot(p.astype(jnp.bfloat16), wx_ref[...],
                           preferred_element_type=jnp.float32)

    @pl.when(k == pl.num_programs(1) - 1)
    def _():
        # pl.reciprocal(approx=True): ~1e-3 rel. error, below the bf16 noise.
        h = acc_sc[...] * pl.reciprocal(l_sc[...], approx=True)
        h_ref[...] = h.astype(h_ref.dtype)               # bf16 writeback
        # Per-tile BN partial statistics (exclude padded rows) via MXU ones-dot,
        # accumulated in f32 *before* the bf16 downcast of h.
        rows = lax.broadcasted_iota(jnp.int32, (1, tm), 1) + i * tm
        valid = (rows < n_real).astype(jnp.float32)      # (1, T)
        psum = jnp.dot(valid, h, preferred_element_type=jnp.float32)
        psq = jnp.dot(valid, h * h, preferred_element_type=jnp.float32)
        stats_ref[...] = jnp.concatenate([psum, psq], axis=0)[None, :, :]


def _bn_relu_kernel(h_ref, scale_ref, shift_ref, o_ref):
    # BN folded to a single multiply-add (scale/shift precomputed) + ReLU.
    h = h_ref[...].astype(jnp.float32)
    o_ref[...] = jnp.maximum(h * scale_ref[...] + shift_ref[...], 0.0)


# ---------------------------------------------------------------- forward ---
def gnn_layer_forward(x, edge_index, embedding, params, *,
                      tile_rows=256, adj_mask=None):
    """x: (N, in_channel), edge_index: (2, E) [src; dst], embedding: (N, C)."""
    n, in_ch = x.shape
    c = params["w"].shape[1]
    c_pad = _round_up(c, 128)                     # lane-dense channel slab

    t, n_pad = _tile_and_pad(n, tile_rows)
    grid_rows = n_pad // t
    grid_cols = n_pad // t

    x_p = jnp.pad(x.astype(jnp.float32), ((0, n_pad - n), (0, 0)))
    emb_p = jnp.pad(embedding.astype(jnp.float32), ((0, n_pad - n), (0, 0)))
    w_p = jnp.pad(params["w"].astype(jnp.float32),
                  ((0, 0), (0, c_pad - c))).astype(jnp.bfloat16)

    if adj_mask is None:                          # reuse a precomputed mask if given
        adj_mask = build_adjacency(edge_index, n, n_pad)

    cp_row = pltpu.CompilerParams(dimension_semantics=("parallel",),
                                  vmem_limit_bytes=_VMEM_LIMIT)
    cp_attn = pltpu.CompilerParams(dimension_semantics=("parallel", "arbitrary"),
                                   vmem_limit_bytes=_VMEM_LIMIT)

    # -------- Pass 1: Linear projection (bf16 MXU, f32 acc, bf16 store). ----
    wx = pl.pallas_call(
        _project_kernel,
        grid=(grid_rows,),
        in_specs=[
            pl.BlockSpec((t, in_ch), lambda i: (i, 0)),
            pl.BlockSpec((in_ch, c_pad), lambda i: (0, 0)),   # tiny constant block
        ],
        out_specs=pl.BlockSpec((t, c_pad), lambda i: (i, 0)),
        out_shape=jax.ShapeDtypeStruct((n_pad, c_pad), jnp.bfloat16),
        compiler_params=cp_row,
    )(x_p, w_p)

    # -------- Per-node attention scores: tiny XLA matmuls (lane-width 2 ------
    # outputs are not worth a masked-store kernel).
    att = jnp.pad(jnp.stack([params["att_i"], params["att_j"]], axis=1),
                  ((0, c_pad - c), (0, 0)))                    # (Cp, 2)
    att_em = jnp.stack([params["att_em_i"], params["att_em_j"]], axis=1)  # (C, 2)
    s = wx.astype(jnp.float32) @ att + emb_p @ att_em          # (Np, 2)
    s_tgt = s[:, 0:1]                                          # (Np, 1)
    s_src = s[:, 1].reshape(1, n_pad)                          # (1, Np)
    # Analytic per-row softmax max bound (padded s_src entries are exactly 0).
    smax = jnp.max(s[:, 1])
    m_row = s_tgt + smax
    m_row = jnp.where(m_row > 0, m_row, _NEG_SLOPE * m_row)    # (Np, 1)

    # -------- Pass 2: column-tiled masked softmax attention + aggregation ---
    # + fused per-row-tile BN partial statistics.
    h, stats = pl.pallas_call(
        partial(_attn_kernel, tm=t, n_real=n),
        grid=(grid_rows, grid_cols),
        in_specs=[
            pl.BlockSpec((t, 1), lambda i, k: (i, 0)),       # s_tgt
            pl.BlockSpec((t, 1), lambda i, k: (i, 0)),       # m_row
            pl.BlockSpec((1, t), lambda i, k: (0, k)),       # s_src
            pl.BlockSpec((t, t), lambda i, k: (i, k)),       # adjacency (int8)
            pl.BlockSpec((t, c_pad), lambda i, k: (k, 0)),   # wx (source block)
        ],
        out_specs=[
            pl.BlockSpec((t, c_pad), lambda i, k: (i, 0)),
            pl.BlockSpec((1, 2, c_pad), lambda i, k: (i, 0, 0)),
        ],
        out_shape=[
            jax.ShapeDtypeStruct((n_pad, c_pad), jnp.bfloat16),
            jax.ShapeDtypeStruct((grid_rows, 2, c_pad), jnp.float32),
        ],
        scratch_shapes=[
            pltpu.VMEM((t, 1), jnp.float32),       # softmax denominator
            pltpu.VMEM((t, c_pad), jnp.float32),   # f32 aggregation accumulator
        ],
        compiler_params=cp_attn,
    )(s_tgt, m_row, s_src, adj_mask, wx)

    # -------- BN scale/shift hoisted out of the per-tile pass (tiny XLA). ---
    sums = jnp.sum(stats, axis=0)                              # (2, Cp)
    inv_n = 1.0 / float(n)
    mean = sums[0] * inv_n
    var = jnp.maximum(sums[1] * inv_n - mean * mean, 0.0)      # one-pass E[h^2]-E[h]^2
    rstd = lax.rsqrt(var + _BN_EPS)
    gamma_p = jnp.pad(params["gamma"].reshape(-1), (0, c_pad - c))
    beta_p = jnp.pad(params["beta"].reshape(-1), (0, c_pad - c))
    scale = (gamma_p * rstd).reshape(1, c_pad)
    shift = (beta_p - mean * gamma_p * rstd).reshape(1, c_pad)

    # -------- Pass 3: streaming BN apply + ReLU. -----------------------------
    out = pl.pallas_call(
        _bn_relu_kernel,
        grid=(grid_rows,),
        in_specs=[
            pl.BlockSpec((t, c_pad), lambda i: (i, 0)),
            pl.BlockSpec((1, c_pad), lambda i: (0, 0)),
            pl.BlockSpec((1, c_pad), lambda i: (0, 0)),
        ],
        out_specs=pl.BlockSpec((t, c_pad), lambda i: (i, 0)),
        out_shape=jax.ShapeDtypeStruct((n_pad, c_pad), jnp.float32),
        compiler_params=cp_row,
    )(h, scale, shift)

    # TODO(synk): attention weights (return_attention_weights attribute stash)
    # are not materialized outside the kernel; forward output is unaffected.
    return out[:n, :c]


# ----------------------------------------------------------- param builder ---
def init_gnn_layer_params(key, in_channel, out_channel):
    """Mirror GraphLayer.reset_parameters (heads=1) + BatchNorm1d defaults."""
    k_w, k_ai, k_aj = jax.random.split(key, 3)
    a_w = math.sqrt(6.0 / (in_channel + out_channel))          # glorot
    w = jax.random.uniform(k_w, (in_channel, out_channel), jnp.float32, -a_w, a_w)
    a_att = math.sqrt(6.0 / (1 + out_channel))
    att_i = jax.random.uniform(k_ai, (out_channel,), jnp.float32, -a_att, a_att)
    att_j = jax.random.uniform(k_aj, (out_channel,), jnp.float32, -a_att, a_att)
    att_em_i = jnp.zeros((out_channel,), jnp.float32)           # zeros() init
    att_em_j = jnp.zeros((out_channel,), jnp.float32)
    # GraphLayer bias (zero-init, per-channel constant) is cancelled by the
    # following BatchNorm mean subtraction -> omitted from the kernels.
    gamma = jnp.ones((1, out_channel), jnp.float32)
    beta = jnp.zeros((1, out_channel), jnp.float32)
    return {"w": w, "att_i": att_i, "att_j": att_j,
            "att_em_i": att_em_i, "att_em_j": att_em_j,
            "gamma": gamma, "beta": beta}


if __name__ == "__main__":
    # Small deterministic example: batch=2 graphs of node_num=100 nodes
    # (GNNLayer's default node_num), in_channel=32, out_channel=64, heads=1.
    batch, node_num = 2, 100
    in_channel, out_channel = 32, 64
    n = batch * node_num

    key = jax.random.PRNGKey(0)
    k_x, k_e, k_p = jax.random.split(key, 3)
    x = jax.random.normal(k_x, (n, in_channel), jnp.float32)
    embedding = jax.random.normal(k_e, (n, out_channel), jnp.float32)

    # Deterministic directed graph: each node receives from 3 ring-neighbours
    # inside its own graph (edge_index[0]=source, edge_index[1]=target).
    srcs, dsts = [], []
    for b in range(batch):
        base = b * node_num
        for i in range(node_num):
            for d in (1, 2, 3):
                srcs.append(base + (i + d) % node_num)
                dsts.append(base + i)
    edge_index = jnp.array([srcs, dsts], dtype=jnp.int32)

    params = init_gnn_layer_params(k_p, in_channel, out_channel)
    # tile_rows=128 so this smoke test exercises the multi-block row
    # ("parallel") and source-column ("arbitrary") grid axes (n_pad=256 -> 2x2).
    out = gnn_layer_forward(x, edge_index, embedding, params, tile_rows=128)
    jax.block_until_ready(out)
    assert out.shape == (n, out_channel)
    assert bool(jnp.all(jnp.isfinite(out)))
    print("KERNEL_OK")
</pallas_src>

<mosaic_0001>
module attributes {stable_mosaic.version = 11 : i64} {
  func.func @_project_kernel(%arg0: i32, %arg1: memref<128x32xf32, #tpu.memory_space<vmem>>, %arg2: memref<32x128xbf16, #tpu.memory_space<vmem>>, %arg3: memref<128x128xbf16, #tpu.memory_space<vmem>>) attributes {dimension_semantics = [#tpu.dimension_semantics<parallel>], iteration_bounds = array<i64: 2>, scalar_prefetch = 0 : i64, scratch_operands = 0 : i64, tpu.core_type = #tpu.core_type<tc>, window_params = [{transform_indices = @transform_0, window_bounds = array<i64: 128, 32>}, {pipeline_mode = #tpu.pipeline_mode<synchronous>, transform_indices = @transform_1, window_bounds = array<i64: 32, 128>}, {transform_indices = @transform_2, window_bounds = array<i64: 128, 128>}]} {
    %c0 = arith.constant 0 : index
    %c0_0 = arith.constant 0 : index
    %0 = vector.load %arg1[%c0, %c0_0] : memref<128x32xf32, #tpu.memory_space<vmem>>, vector<128x32xf32>
    %1 = arith.truncf %0 : vector<128x32xf32> to vector<128x32xbf16>
    %c0_1 = arith.constant 0 : index
    %c0_2 = arith.constant 0 : index
    %2 = vector.load %arg2[%c0_1, %c0_2] : memref<32x128xbf16, #tpu.memory_space<vmem>>, vector<32x128xbf16>
    %cst = arith.constant dense<0.000000e+00> : vector<128x128xf32>
    %3 = tpu.matmul %1, %2, %cst {dimension_numbers = #tpu.dot_dimension_numbers<[1], [0], [0], [1], [0, 0, 1, 1], [], []>} : vector<128x32xbf16>, vector<32x128xbf16>, vector<128x128xf32> -> vector<128x128xf32>
    %4 = arith.truncf %3 : vector<128x128xf32> to vector<128x128xbf16>
    %c0_3 = arith.constant 0 : index
    %c0_4 = arith.constant 0 : index
    %5 = vector.load %arg3[%c0_3, %c0_4] : memref<128x128xbf16, #tpu.memory_space<vmem>>, vector<128x128xbf16>
    tpu.vector_store %arg3[%c0_3, %c0_4], %4 {strides = array<i32>} : memref<128x128xbf16, #tpu.memory_space<vmem>>, vector<128x128xbf16>,
    return
  }
  func.func @transform_0(%arg0: i32) -> (i32, i32) {
    %c0_i32 = arith.constant 0 : i32
    %c0_i32_0 = arith.constant 0 : i32
    return %arg0, %c0_i32 : i32, i32
  }
  func.func @transform_1(%arg0: i32) -> (i32, i32) {
    %c0_i32 = arith.constant 0 : i32
    %c0_i32_0 = arith.constant 0 : i32
    %c0_i32_1 = arith.constant 0 : i32
    return %c0_i32, %c0_i32_0 : i32, i32
  }
  func.func @transform_2(%arg0: i32) -> (i32, i32) {
    %c0_i32 = arith.constant 0 : i32
    %c0_i32_0 = arith.constant 0 : i32
    return %arg0, %c0_i32 : i32, i32
  }
}

</mosaic_0001>

<bundles_post_ra>
// kernel: tpu_custom_call.1
= control target key start
LH: loop header
LB: loop body
LE: loop exit
PB: predicated region body
PF: predicated region fallthrough
CT: control target
= control target key end

     0   :  { %7 = vsyncpa [#allocation3], 0  ;;  %s863_s0 = inlined_call_operand.vmem [shape: f32[256,32], index: 0, kind: input, shape index: {}]   ;;  %s864_s1 = inlined_call_operand.vmem [shape: bf16[32,128], index: 1, kind: input, shape index: {}]   ;;  %s865_s2 = inlined_call_operand.hbm [shape: bf16[256,128], index: 2, kind: output, shape index: {}]  }
   0x1   :  { %9 = vsyncpa [#allocation3 + $0x1], 0  ;;  %s725_s9 = smov 0   ;;  %s727_s10 = smov 0  }
   0x2   :  { %s729_s11 = smov 0   ;;  %s731_s12 = smov 0  }
   0x3 LB: > { %s746_s13 = sadd.s32 4294967295, %s705_s12   ;;  %s464_s14 = sadd.s32 4294967294, %s705_s12   ;;  %s705_s12 = sphi %s731_s12, %s871_s12   ;;  %s701_s11 = sphi %s729_s11, %s870_s11   ;;  %s697_s10 = sphi %s727_s10, %s869_s10   ;;  %s693_s9 = sphi %s725_s9, %s868_s9  }
   0x4   : > { %s750_s15 = sadd.s32 1, %s705_s12   ;;  %s69_s16 = sadd.s32 1, %s701_s11 }
   0x5   : > { %s66_s17 = ssub.s32 %s705_s12, %s750_s15  ;;  %p79_p0 = scmp.ne.s32.totalorder %s701_s11, %s697_s10 }
   0x6   : > { %p67_p1 = scmp.eq.s32.totalorder %s66_s17, 0  ;;  %p80_p2 = scmp.eq.s32.totalorder %s746_s13, 1 }
   0x7   : > { %p85_p3 = scmp.ne.s32.totalorder %s697_s10, %s693_s9  ;;  %p86_p4 = scmp.eq.s32.totalorder %s464_s14, 1 }
   0x8   : > { %s761_s18 = scalar_select %p67_p1, %s701_s11, %s69_s16  }
   0x9   : > { %p763_p5 = por %p80_p2, %p79_p0  ;;  %p767_p6 = por %p86_p4, %p85_p3 }
   0xa   : > { %p467_p7 = scmp.ge.s32.totalorder %s705_s12, 1  ;;  %p116_p8 = scmp.lt.s32.totalorder %s705_s12, 3 }
   0xc   : > { %p117_p9 = pnand %p467_p7, %p116_p8 }
   0xd   : > { %v641_v0 = vld [vmem:[%s864_s1] sm:$0xff] (!%p117_p9)   ;;  %s469_s23 = sshll.u32 (!%p117_p9), %s746_s13, 4  ;;  %v642_v1 = vld [vmem:[%s864_s1 + $0x8] sm:$0xff] (!%p117_p9)   ;;  %vm186_vm0 = vcmask (!%p117_p9), 261120   ;;  %s135_s30 = sand.u32 (!%p117_p9), 1, %s697_s10  }
   0xe   : > { %120 = sbr.rel (%p117_p9) target bundleno = 269 (0x10d), region = 28  ;;  %p139_p10 = scmp.lt.s32.totalorder (!%p117_p9), %s469_s23, 31  ;;  %576 = vmatprep.subr.bf16.mxu0 (!%p117_p9), %v641_v0  ;;  %596 = vmatprep.subr.bf16.mxu1 (!%p117_p9), %v641_v0 }
   0xf   : > { %577 = vmatpush3.bf16.msra.mxu0 (!%p117_p9), %v641_v0  ;;  %598 = vmatpush3.bf16.msra.mxu1 (!%p117_p9), %v641_v0  ;;  %s468_s3 = sshll.u32 (!%p117_p9), %s135_s30, 6  ;;  %s518_s5 = sshll.u32 (!%p117_p9), %s746_s13, 10 }
  0x10   : > { %578 = vmatprep.subr.bf16.mxu0 (!%p117_p9), %v642_v1  ;;  %597 = vmatprep.subr.bf16.mxu1 (!%p117_p9), %v642_v1  ;;  %s137_s4 = scalar_lea.vmem (!%p117_p9), [#allocation2], %s468_s3  ;;  %s816_s14 = scalar_lea.hbm (!%p117_p9), %s865_s2, %s518_s5 }
  0x11   : > { %s402_s6 = sshll.u32 (!%p117_p9), %s137_s4, 4  ;;  %s822_s13 = scalar_lea.sflag (!%p117_p9), [#allocation3], %s135_s30  ;;  %s818_s6 = int_to_ptr.vmem [resolvable:$true] %s402_s6 }
  0x12   : > { %s643_s16 = scalar_lea.vmem (!%p117_p9), %s818_s6, 1024  ;;  %s707_s17 = smov (!%p117_p9), [#allocation2]  }
  0x13   : > { %579 = vmatpush3.bf16.msra.mxu0 (!%p117_p9), %v642_v1  ;;  %599 = vmatpush3.bf16.msra.mxu1 (!%p117_p9), %v642_v1  ;;  %p644_p11 = scmp.ne.s32.totalorder (!%p117_p9), %s818_s6, %s643_s16  ;;  %s647_s21 = sshll.u32 (!%p117_p9), %s707_s17, 4  ;;  %s648_s21 = int_to_ptr.vmem [resolvable:$false] %s647_s21 }
  0x14   : > { %s649_s22 = scalar_lea.vmem (!%p117_p9), %s648_s21, 2048  ;;  %p650_p0 = scmp.lt.s32.totalorder (!%p117_p9), %s818_s6, %s648_s21 }
  0x15   : > { %s873_s23 = smov (!%p139_p10, %s469_s23), 31  ;;  %p645_p12 = pnand %p644_p11, %p763_p5 }
  0x16   : > { %s470_s26 = sshll.u32 %s873_s23, 3  ;;  %p651_p1 = scmp.lt.s32.totalorder %s649_s22, %s643_s16 }
  0x17   : > { %s783_s29 = scalar_lea.vmem %s863_s0, %s470_s26  ;;  %p646_p13 = pneg %p645_p12 }
  0x18   : > { %v146_v2 = vld [vmem:[%s783_s29] sm:$0xff]  ;;  %v147_v3 = vld [vmem:[%s783_s29 + $0x8] sm:$0xff]  ;;  %v148_v7 = vld [vmem:[%s783_s29 + $0x10] sm:$0xff]  ;;  %p652_p2 = por %p651_p1, %p650_p0 }
  0x19   : > { %v154_v4 = vld [vmem:[%s783_s29 + $0x40] sm:$0xff]  ;;  %v162_v5 = vpack.c.bf16 %v147_v3, %v146_v2  ;;  %v155_v6 = vld [vmem:[%s783_s29 + $0x48] sm:$0xff]  ;;  %v149_v8 = vld [vmem:[%s783_s29 + $0x18] sm:$0xff] }
  0x1a   : > { %v166_v9 = vpack.c.bf16 %v155_v6, %v154_v4  ;;  %v163_v10 = vpack.c.bf16 %v149_v8, %v148_v7  ;;  %v156_v11 = vld [vmem:[%s783_s29 + $0x50] sm:$0xff]  ;;  %v157_v12 = vld [vmem:[%s783_s29 + $0x58] sm:$0xff]  ;;  %v150_v13 = vld [vmem:[%s783_s29 + $0x20] sm:$0xff]  ;;  %p653_p3 = pnand %p652_p2, %p646_p13 }
  0x1b   : > { %580 = vmatprep.mubr.msk.bf16.mxu0 %vm186_vm0, %v162_v5  ;;  %v167_v14 = vpack.c.bf16 %v157_v12, %v156_v11  ;;  %v151_v15 = vld [vmem:[%s783_s29 + $0x28] sm:$0xff]  ;;  %v158_v16 = vld [vmem:[%s783_s29 + $0x60] sm:$0xff]  ;;  %v152_v20 = vld [vmem:[%s783_s29 + $0x30] sm:$0xff] }
  0x1c   : > { %v159_v17 = vld [vmem:[%s783_s29 + $0x68] sm:$0xff]  ;;  %588 = vmatprep.mubr.msk.bf16.mxu1 %vm186_vm0, %v166_v9  ;;  %581 = vmatmul.mubr.msk.bf16.vlgmr.msra.gmra.mrb[0].mxu0 %vm186_vm0, %v163_v10  ;;  %v164_v18 = vpack.c.bf16 %v151_v15, %v150_v13  ;;  %v153_v21 = vld [vmem:[%s783_s29 + $0x38] sm:$0xff]  ;;  %v160_v22 = vld [vmem:[%s783_s29 + $0x70] sm:$0xff] }
  0x1d   : > { %v168_v19 = vpack.c.bf16 %v159_v17, %v158_v16  ;;  %589 = vmatmul.mubr.msk.bf16.vlgmr.msra.gmra.mrb[0].mxu1 %vm186_vm0, %v167_v14  ;;  %v161_v23 = vld [vmem:[%s783_s29 + $0x78] sm:$0xff]  ;;  %v165_v24 = vpack.c.bf16 %v153_v21, %v152_v20 }
  0x1e   : > { %584 = vmatprep.mubr.msk.bf16.mxu0 %vm186_vm0, %v164_v18  ;;  %v169_v25 = vpack.c.bf16 %v161_v23, %v160_v22 }
  0x1f   : > { %592 = vmatprep.mubr.msk.bf16.mxu1 %vm186_vm0, %v168_v19 }
  0x24   : > { %585 = vmatmul.mubr.msk.bf16.gmra.mrb[4].mxu0 %vm186_vm0, %v165_v24 }
  0x25   : > { %593 = vmatmul.mubr.msk.bf16.gmra.mrb[4].mxu1 %vm186_vm0, %v169_v25 }
  0xef   : > { %v582_v26 = vpop.f32.mrb[0].mxu0 }
  0xf0   : > { %v590_v27 = vpop.f32.mrb[0].mxu1  ;;  %v245_v28 = vpop.f32.mrb[1].mxu0 }
  0xf1   : > { %v277_v29 = vpop.f32.mrb[1].mxu1  ;;  %v583_v30 = vpop.f32.mrb[2].mxu0 }
  0xf2   : > { %v527_v31 = vpack.c.bf16 %v583_v30, %v582_v26  ;;  %v591_v32 = vpop.f32.mrb[2].mxu1  ;;  %v248_v33 = vpop.f32.mrb[3].mxu0 }
  0xf3   : > { %v547_v34 = vpack.c.bf16 %v591_v32, %v590_v27  ;;  %v522_v35 = vpack.c.bf16 %v248_v33, %v245_v28  ;;  %v280_v36 = vpop.f32.mrb[3].mxu1 }
  0xf4   : > { %559 = vst [vmem:[%s137_s4 + $0x8] sm:$0xff] %v527_v31   ;;  %v542_v37 = vpack.c.bf16 %v280_v36, %v277_v29 }
  0xf5   : > { %563 = vst [vmem:[%s137_s4 + $0x28] sm:$0xff] %v547_v34   ;;  %523 = vst [vmem:[%s137_s4] sm:$0xff] %v522_v35  }
  0xf6   : > { %562 = vst [vmem:[%s137_s4 + $0x20] sm:$0xff] %v542_v37  }
  0xf7   : > { %v586_v38 = vpop.f32.mrb[4].mxu0 }
  0xf8   : > { %v594_v39 = vpop.f32.mrb[4].mxu1  ;;  %v261_v40 = vpop.f32.mrb[5].mxu0 }
  0xf9   : > { %v293_v41 = vpop.f32.mrb[5].mxu1  ;;  %v587_v42 = vpop.f32.mrb[6].mxu0 }
  0xfa   : > { %v537_v43 = vpack.c.bf16 %v587_v42, %v586_v38  ;;  %v595_v44 = vpop.f32.mrb[6].mxu1  ;;  %v264_v45 = vpop.f32.mrb[7].mxu0 }
  0xfb   : > { %v557_v46 = vpack.c.bf16 %v595_v44, %v594_v39  ;;  %v532_v47 = vpack.c.bf16 %v264_v45, %v261_v40  ;;  %v296_v48 = vpop.f32.mrb[7].mxu1 }
  0xfc   : > { %561 = vst [vmem:[%s137_s4 + $0x18] sm:$0xff] %v537_v43   ;;  %v552_v49 = vpack.c.bf16 %v296_v48, %v293_v41 }
  0xfd   : > { %565 = vst [vmem:[%s137_s4 + $0x38] sm:$0xff] %v557_v46   ;;  %560 = vst [vmem:[%s137_s4 + $0x10] sm:$0xff] %v532_v47  }
  0xfe   : > { %564 = vst [vmem:[%s137_s4 + $0x30] sm:$0xff] %v552_v49  }
  0xff   : > { %656 = shalt.err (!%p653_p3)
}
 0x100   : > { %s657_s23 = scalar_lea.hbm %s816_s14, 1024  ;;  %s661_s26 = scalar_lea.hbm %s865_s2, 2048 }
 0x101   : > { %p658_p4 = scmp.ne.s32.totalorder %s816_s14, %s657_s23  ;;  %p662_p9 = scmp.lt.u32.totalorder %s816_s14, %s865_s2 }
 0x102   : > { %p663_p10 = scmp.lt.u32.totalorder %s661_s26, %s657_s23  ;;  %p665_p12 = scmp.lt.u32.totalorder %s657_s23, %s816_s14 }
 0x103   : > { %p659_p7 = pnand %p658_p4, %p763_p5 }
 0x104   : > { %p664_p11 = por %p663_p10, %p662_p9 }
 0x105   : > { %p660_p8 = pneg %p659_p7 }
 0x106   : > { %p666_p13 = por %p665_p12, %p664_p11 }
 0x108   : > { %p667_p0 = pnand %p666_p13, %p660_p8 }
 0x10a   : > { %670 = shalt.err (!%p667_p0)
}
 0x10b   : > { %s708_s29 = smov 64   ;;  %s709_s30 = smov 4  }
 0x10c   : > { %600 = dma.vmem_to_hbm [thread:$0]  (%p763_p5), %s818_s6, 1024, %s816_s14, %s822_s13, %s708_s29, %s708_s29, %s709_s30  }
 0x10d PF: > { %p606_p1 = scmp.ge.s32.totalorder %s705_s12, 2  ;;  %s417_s3 = sand.u32 1, %s693_s9  }
 0x10e   : > { %s418_s4 = scalar_lea.sflag [#allocation3], %s417_s3 }
 0x10f   : > { %p603_p2 = pnand %p606_p1, %p767_p6 }
 0x111   : > { %688 = dma.done.wait (!%p603_p2), %s418_s4, 1024  }
 0x112   : > { %690 = vsyncadd (!%p603_p2), %s418_s4, 4294966272  ;;  %p12_p3 = scmp.ge.s32.totalorder %s750_s15, 4   ;;  %s868_s9 = smov %s697_s10 }
 0x113   : > { %s869_s10 = smov %s701_s11  ;;  %s870_s11 = smov %s761_s18 }
 0x114   : > { %s871_s12 = smov %s750_s15  ;;  %14 = sbr.rel (!%p12_p3) target bundleno = 3 (0x3), region = 63 }
 0x11b   :  { %423 = vsyncpa [#allocation3], 1 }
 0x11c   :  { %425 = vsyncpa [#allocation3 + $0x1], 1 }

</bundles_post_ra>
